<compile_context>
chip_gen: v6e
topology: v6e:2x2x1
jax: 0.10.0
libtpu: 0.0.40
codegen_flags: <defaults>
</compile_context>

<pallas_src>
import jax
import jax.numpy as jnp
from jax.experimental import pallas as pl
from jax.experimental.pallas import tpu as pltpu

KSIZE, STRIDE, PADDING = 3, 2, 1
BN_EPS = 1e-5
LANE = 128
NEG_INF = -1e30
VMEM_LIMIT = 48 * 1024 * 1024   # stay below v7x's 64 MiB physical VMEM
MAX_TM = 8192                   # conv tile along the lane-major M axis (x128)
MAX_TN = 1024                   # head tile along batch rows (x8)


def _round_up(x, m):
    return ((x + m - 1) // m) * m


def _pick_tile(m_true, max_tile):
    """Single exact-size tile when it fits (no HBM pad/slice); else aligned tiles."""
    if m_true <= max_tile:
        return m_true, m_true, 1
    m_pad = _round_up(m_true, max_tile)
    return max_tile, m_pad, m_pad // max_tile


# ----------------------------- Pallas kernels ------------------------------ #

def _make_fused_conv_kernel(m_true, m_pad, tm):
    """Fused conv + training-mode BatchNorm + ReLU in one pallas_call.

    Per M tile: Y_tile = W(bf16) @ P_tile(bf16) + b (f32 accumulate) is written
    into the VMEM-resident output slab and per-channel sum / sum-of-squares
    accumulate in scratch.  At the last tile the batch statistics are folded
    into scale/shift and BN + ReLU are applied to the resident output in place.
    """
    inv_m = 1.0 / float(m_true)
    pad_cols = float(m_pad - m_true)
    n_tiles = m_pad // tm
    single_tile = (n_tiles == 1)

    def kernel(w_ref, b_ref, g_ref, bt_ref, p_ref, o_ref, sum_ref, ssq_ref):
        m = pl.program_id(0)

        @pl.when(m == 0)
        def _init():
            sum_ref[...] = jnp.zeros_like(sum_ref)
            ssq_ref[...] = jnp.zeros_like(ssq_ref)

        # Lane-dense conv tile on the MXU: [Cout, K] @ [K, TM] -> [Cout, TM].
        y = jnp.dot(w_ref[...], p_ref[...],
                    preferred_element_type=jnp.float32) + b_ref[...]
        sum_ref[...] += jnp.sum(y, axis=1, keepdims=True)
        ssq_ref[...] += jnp.sum(y * y, axis=1, keepdims=True)

        if single_tile:
            o_ref[...] = y
        else:
            start = pl.multiple_of(m * tm, 128)
            o_ref[:, pl.ds(start, tm)] = y

        @pl.when(m == pl.num_programs(0) - 1)
        def _finalize():
            b = b_ref[...]
            # Zero-padded patch columns contribute exactly b (and b^2) each.
            s = sum_ref[...] - pad_cols * b
            ss = ssq_ref[...] - pad_cols * b * b
            mean = s * inv_m
            var = ss * inv_m - mean * mean            # biased, training-mode BN
            scale = g_ref[...] * jax.lax.rsqrt(var + BN_EPS)
            shift = bt_ref[...] - mean * scale

            if single_tile:
                o_ref[...] = jnp.maximum(o_ref[...] * scale + shift, 0.0)
            else:
                def body(t, carry):
                    st = pl.multiple_of(t * tm, 128)
                    blk = o_ref[:, pl.ds(st, tm)]
                    o_ref[:, pl.ds(st, tm)] = jnp.maximum(
                        blk * scale + shift, 0.0)
                    return carry
                jax.lax.fori_loop(0, n_tiles, body, 0)

    return kernel


def head_kernel(w1_ref, b1_ref, w2_ref, b2_ref, z_ref, o_ref):
    """Fused fc1 -> fc2 -> numerically-stable log_softmax per row tile.
    The class axis is pre-padded to 128 lanes (pad bias = -1e30) so the output
    store is lane-dense / unmasked; padded lanes contribute exp(.) == 0."""
    h = jnp.dot(z_ref[...], w1_ref[...],
                preferred_element_type=jnp.float32) + b1_ref[...]
    logits = jnp.dot(h, w2_ref[...],
                     preferred_element_type=jnp.float32) + b2_ref[...]
    mx = jnp.max(logits, axis=1, keepdims=True)
    s = logits - mx
    lse = jnp.log(jnp.sum(jnp.exp(s), axis=1, keepdims=True))
    o_ref[...] = s - lse


# --------------------------- pallas_call wrappers --------------------------- #

def conv_bn_relu_fused(patches, wmat, b, gamma, beta):
    """patches: [K, M] f32 (M lane-major).  One fused pallas_call.
    Returns post-BN/ReLU activations [Cout, M] f32."""
    cout, k_dim = wmat.shape
    m_true = patches.shape[1]
    tm, m_pad, n_tiles = _pick_tile(m_true, MAX_TM)

    p = patches.astype(jnp.bfloat16)               # halve the dominant HBM read
    if m_pad != m_true:
        p = jnp.pad(p, ((0, 0), (0, m_pad - m_true)))
    w_bf = wmat.astype(jnp.bfloat16)
    b2 = b.reshape(cout, 1).astype(jnp.float32)
    g2 = gamma.reshape(cout, 1).astype(jnp.float32)
    bt2 = beta.reshape(cout, 1).astype(jnp.float32)

    resident = lambda m: (0, 0)
    small_spec = pl.BlockSpec((cout, 1), resident)
    w_spec = pl.BlockSpec((cout, k_dim), resident)
    p_spec = pl.BlockSpec((k_dim, tm), lambda m: (0, m))

    y = pl.pallas_call(
        _make_fused_conv_kernel(m_true, m_pad, tm),
        out_shape=jax.ShapeDtypeStruct((cout, m_pad), jnp.float32),
        grid_spec=pltpu.PrefetchScalarGridSpec(
            num_scalar_prefetch=0,
            grid=(n_tiles,),
            in_specs=[w_spec, small_spec, small_spec, small_spec, p_spec],
            # Resident across the whole (reduction-coupled) M axis.
            out_specs=pl.BlockSpec((cout, m_pad), resident),
            scratch_shapes=[pltpu.VMEM((cout, 1), jnp.float32),
                            pltpu.VMEM((cout, 1), jnp.float32)],
        ),
        compiler_params=pltpu.CompilerParams(
            dimension_semantics=("arbitrary",),
            vmem_limit_bytes=VMEM_LIMIT),
        cost_estimate=pl.CostEstimate(
            flops=2 * m_pad * k_dim * cout + 8 * m_pad * cout,
            transcendentals=cout,
            bytes_accessed=2 * k_dim * m_pad + 4 * cout * m_pad
                           + 2 * cout * k_dim + 48 * cout),
    )(w_bf, b2, g2, bt2, p)

    return y if m_pad == m_true else y[:, :m_true]


def head(z, w1, b1, w2p, b2p, out_dim):
    """z: [N, hidden].  w2p/b2p are pre-padded to 128 class columns."""
    n, hidden = z.shape
    latent = w1.shape[1]
    padded_out = w2p.shape[1]
    tn, n_pad, n_tiles = _pick_tile(n, MAX_TN)
    zp = z if n_pad == n else jnp.pad(z, ((0, n_pad - n), (0, 0)))

    resident = lambda i: (0, 0)
    out = pl.pallas_call(
        head_kernel,
        out_shape=jax.ShapeDtypeStruct((n_pad, padded_out), jnp.float32),
        grid_spec=pltpu.PrefetchScalarGridSpec(
            num_scalar_prefetch=0,
            grid=(n_tiles,),
            in_specs=[pl.BlockSpec((hidden, latent), resident),
                      pl.BlockSpec((1, latent), resident),
                      pl.BlockSpec((latent, padded_out), resident),
                      pl.BlockSpec((1, padded_out), resident),
                      pl.BlockSpec((tn, hidden), lambda i: (i, 0))],
            out_specs=pl.BlockSpec((tn, padded_out), lambda i: (i, 0)),
        ),
        compiler_params=pltpu.CompilerParams(
            dimension_semantics=("parallel",),
            vmem_limit_bytes=VMEM_LIMIT),
        cost_estimate=pl.CostEstimate(
            flops=2 * n_pad * (hidden * latent + latent * padded_out)
                  + 5 * n_pad * padded_out,
            transcendentals=n_pad * padded_out,
            bytes_accessed=4 * (n_pad * (hidden + padded_out)
                                + hidden * latent + latent * padded_out
                                + latent + padded_out)),
    )(w1, b1, w2p, b2p, zp)

    out = out[:, :out_dim]
    return out if n_pad == n else out[:n]


# ------------------------------- JAX glue ----------------------------------- #

def im2col_cnhw(x, k=KSIZE, s=STRIDE, p=PADDING):
    """x: [C, N, H, W] -> patches [k*k*C, N*Ho*Wo].
    Rows ordered (kh, kw, c) to match the flattened torch conv weight; columns
    ordered (n, ho, wo) so the conv matmul output is lane-dense along M."""
    c, n, h, w = x.shape
    xp = jnp.pad(x, ((0, 0), (0, 0), (p, p), (p, p)))
    ho = (h + 2 * p - k) // s + 1
    wo = (w + 2 * p - k) // s + 1
    cols = [xp[:, :, kh:kh + s * ho:s, kw:kw + s * wo:s]
            for kh in range(k) for kw in range(k)]
    patches = jnp.stack(cols, axis=0)                 # [k*k, C, N, Ho, Wo]
    return patches.reshape(k * k * c, n * ho * wo), (ho, wo)


def _torch_conv_w_to_mat(w):
    # torch [Cout, Cin, kh, kw] -> [Cout, kh*kw*Cin], matching im2col row order
    cout = w.shape[0]
    return jnp.transpose(w, (0, 2, 3, 1)).reshape(cout, -1)


def init_params(key):
    ks = jax.random.split(key, 8)

    def rnd(k, shape, scale):
        return (scale * jax.random.normal(k, shape)).astype(jnp.float32)

    # Shapes mirror the PyTorch module's parameters (torch layouts kept).
    return {
        "conv1_w": rnd(ks[0], (6, 1, 3, 3), 0.2),
        "conv1_b": rnd(ks[1], (6,), 0.1),
        "bn1_g": jnp.ones((6,), jnp.float32),
        "bn1_b": jnp.zeros((6,), jnp.float32),
        "conv2_w": rnd(ks[2], (16, 6, 3, 3), 0.1),
        "conv2_b": rnd(ks[3], (16,), 0.1),
        "bn2_g": jnp.ones((16,), jnp.float32),
        "bn2_b": jnp.zeros((16,), jnp.float32),
        "fc1_w": rnd(ks[4], (32, 784), 0.05),   # torch Linear: [out, in]
        "fc1_b": rnd(ks[5], (32,), 0.05),
        "fc2_w": rnd(ks[6], (10, 32), 0.1),
        "fc2_b": rnd(ks[7], (10,), 0.1),
    }


def net_forward(x_nchw, params):
    """x_nchw: [N, 1, 28, 28] float32. Returns log_softmax logits [N, 10]."""
    n = x_nchw.shape[0]

    # encode_cnn0 + encode_batchnorm0 + relu0 (one fused pallas_call)
    x_c = jnp.transpose(x_nchw, (1, 0, 2, 3))         # [Cin=1, N, 28, 28]
    p1, (h1, w1o) = im2col_cnhw(x_c)
    c1 = params["conv1_w"].shape[0]
    y1 = conv_bn_relu_fused(p1, _torch_conv_w_to_mat(params["conv1_w"]),
                            params["conv1_b"], params["bn1_g"], params["bn1_b"])

    # encode_cnn1 + encode_batchnorm1 + relu1 — conv1 output is already CNHW.
    p2, (h2, w2o) = im2col_cnhw(y1.reshape(c1, n, h1, w1o))
    c2 = params["conv2_w"].shape[0]
    y2 = conv_bn_relu_fused(p2, _torch_conv_w_to_mat(params["conv2_w"]),
                            params["conv2_b"], params["bn2_g"], params["bn2_b"])

    # flatten2: torch nn.Flatten(1) on NCHW == channel-major flatten -> [N, 784]
    z = jnp.transpose(y2.reshape(c2, n, h2 * w2o), (1, 0, 2)).reshape(n, -1)

    # encode_fc1 -> decode_fc2 -> log_softmax(dim=1), lane-dense class padding
    out_dim = params["fc2_w"].shape[0]
    w2p = jnp.zeros((params["fc2_w"].shape[1], LANE), jnp.float32
                    ).at[:, :out_dim].set(params["fc2_w"].T)
    b2p = jnp.full((1, LANE), NEG_INF, jnp.float32
                   ).at[0, :out_dim].set(params["fc2_b"])
    return head(z, params["fc1_w"].T, params["fc1_b"].reshape(1, -1),
                w2p, b2p, out_dim)


def net_forward_ref(x_nchw, params, conv_dtype=jnp.float32):
    """Pure-JAX reference of the same forward (training-mode BN).
    conv_dtype=bfloat16 mirrors the kernel's MXU operand precision."""
    def block(x, w, b, g, bt):
        y = jax.lax.conv_general_dilated(
            x.astype(conv_dtype), w.astype(conv_dtype),
            window_strides=(STRIDE, STRIDE),
            padding=((PADDING, PADDING), (PADDING, PADDING)),
            dimension_numbers=("NCHW", "OIHW", "NCHW"),
            preferred_element_type=jnp.float32)
        y = y + b[None, :, None, None]
        mean = jnp.mean(y, axis=(0, 2, 3), keepdims=True)
        var = jnp.mean(jnp.square(y - mean), axis=(0, 2, 3), keepdims=True)
        y = (y - mean) * jax.lax.rsqrt(var + BN_EPS)
        y = y * g[None, :, None, None] + bt[None, :, None, None]
        return jnp.maximum(y, 0.0)

    y1 = block(x_nchw, params["conv1_w"], params["conv1_b"],
               params["bn1_g"], params["bn1_b"])
    y2 = block(y1, params["conv2_w"], params["conv2_b"],
               params["bn2_g"], params["bn2_b"])
    z = y2.reshape(y2.shape[0], -1)
    h = z @ params["fc1_w"].T + params["fc1_b"]
    logits = h @ params["fc2_w"].T + params["fc2_b"]
    return jax.nn.log_softmax(logits, axis=1)


if __name__ == "__main__":
    key = jax.random.PRNGKey(0)
    k_x, k_p = jax.random.split(key)

    # Small MNIST-shaped batch: [2, 1, 28, 28] (NCHW, like PyTorch).
    x = jax.random.normal(k_x, (2, 1, 28, 28), dtype=jnp.float32)
    params = init_params(k_p)

    fwd = jax.jit(net_forward)
    out = jax.block_until_ready(fwd(x, params))

    # Reference with matching conv-operand precision (tight tolerance) and the
    # fully-f32 PyTorch-faithful reference (loose tolerance for bf16 operands).
    ref_same = net_forward_ref(x, params, conv_dtype=jnp.bfloat16)
    ref_f32 = net_forward_ref(x, params, conv_dtype=jnp.float32)

    assert out.shape == (2, 10)
    assert bool(jnp.all(jnp.isfinite(out)))
    assert bool(jnp.allclose(out, ref_same, rtol=5e-3, atol=5e-3))
    assert bool(jnp.allclose(out, ref_f32, rtol=3e-2, atol=3e-2))
    # rows of log_softmax should exponentiate-sum to ~1
    assert bool(jnp.allclose(jnp.sum(jnp.exp(out), axis=1), 1.0, atol=1e-4))

    print("KERNEL_OK")
</pallas_src>

<mosaic_0001>
module attributes {stable_mosaic.version = 11 : i64} {
  func.func @kernel(%arg0: i32, %arg1: memref<6x9xbf16, #tpu.memory_space<vmem>>, %arg2: memref<6x1xf32, #tpu.memory_space<vmem>>, %arg3: memref<6x1xf32, #tpu.memory_space<vmem>>, %arg4: memref<6x1xf32, #tpu.memory_space<vmem>>, %arg5: memref<9x392xbf16, #tpu.memory_space<vmem>>, %arg6: memref<6x392xf32, #tpu.memory_space<vmem>>, %arg7: memref<6x1xf32, #tpu.memory_space<vmem>>, %arg8: memref<6x1xf32, #tpu.memory_space<vmem>>) attributes {dimension_semantics = [#tpu.dimension_semantics<arbitrary>], iteration_bounds = array<i64: 1>, scalar_prefetch = 0 : i64, scratch_operands = 2 : i64, tpu.core_type = #tpu.core_type<tc>, window_params = [{pipeline_mode = #tpu.pipeline_mode<synchronous>, transform_indices = @transform_0, window_bounds = array<i64: 6, 9>}, {pipeline_mode = #tpu.pipeline_mode<synchronous>, transform_indices = @transform_1, window_bounds = array<i64: 6, 1>}, {pipeline_mode = #tpu.pipeline_mode<synchronous>, transform_indices = @transform_2, window_bounds = array<i64: 6, 1>}, {pipeline_mode = #tpu.pipeline_mode<synchronous>, transform_indices = @transform_3, window_bounds = array<i64: 6, 1>}, {transform_indices = @transform_4, window_bounds = array<i64: 9, 392>}, {pipeline_mode = #tpu.pipeline_mode<synchronous>, transform_indices = @transform_5, window_bounds = array<i64: 6, 392>}]} {
    %c0_i32 = arith.constant 0 : i32
    %0 = arith.cmpi eq, %arg0, %c0_i32 : i32
    %1 = arith.extui %0 : i1 to i32
    %c0_i32_0 = arith.constant 0 : i32
    %2 = arith.cmpi ne, %1, %c0_i32_0 : i32
    scf.if %2 {
      %cst_20 = arith.constant 0.000000e+00 : f32
      %24 = vector.broadcast %cst_20 : f32 to vector<6x1xf32>
      %c0_21 = arith.constant 0 : index
      %c0_22 = arith.constant 0 : index
      %25 = vector.load %arg7[%c0_21, %c0_22] : memref<6x1xf32, #tpu.memory_space<vmem>>, vector<6x1xf32>
      tpu.vector_store %arg7[%c0_21, %c0_22], %24 {strides = array<i32>} : memref<6x1xf32, #tpu.memory_space<vmem>>, vector<6x1xf32>,
      %cst_23 = arith.constant 0.000000e+00 : f32
      %26 = vector.broadcast %cst_23 : f32 to vector<6x1xf32>
      %c0_24 = arith.constant 0 : index
      %c0_25 = arith.constant 0 : index
      %27 = vector.load %arg8[%c0_24, %c0_25] : memref<6x1xf32, #tpu.memory_space<vmem>>, vector<6x1xf32>
      tpu.vector_store %arg8[%c0_24, %c0_25], %26 {strides = array<i32>} : memref<6x1xf32, #tpu.memory_space<vmem>>, vector<6x1xf32>,
    } else {
    }
    %c0 = arith.constant 0 : index
    %c0_1 = arith.constant 0 : index
    %3 = vector.load %arg1[%c0, %c0_1] : memref<6x9xbf16, #tpu.memory_space<vmem>>, vector<6x9xbf16>
    %c0_2 = arith.constant 0 : index
    %c0_3 = arith.constant 0 : index
    %4 = vector.load %arg5[%c0_2, %c0_3] : memref<9x392xbf16, #tpu.memory_space<vmem>>, vector<9x392xbf16>
    %cst = arith.constant dense<0.000000e+00> : vector<6x392xf32>
    %5 = tpu.matmul %3, %4, %cst {dimension_numbers = #tpu.dot_dimension_numbers<[1], [0], [0], [1], [0, 0, 1, 1], [], []>} : vector<6x9xbf16>, vector<9x392xbf16>, vector<6x392xf32> -> vector<6x392xf32>
    %c0_4 = arith.constant 0 : index
    %c0_5 = arith.constant 0 : index
    %6 = vector.load %arg2[%c0_4, %c0_5] : memref<6x1xf32, #tpu.memory_space<vmem>>, vector<6x1xf32>
    %7 = vector.broadcast %6 : vector<6x1xf32> to vector<6x392xf32>
    %8 = arith.addf %5, %7 : vector<6x392xf32>
    %c0_6 = arith.constant 0 : index
    %c0_7 = arith.constant 0 : index
    %9 = vector.load %arg7[%c0_6, %c0_7] : memref<6x1xf32, #tpu.memory_space<vmem>>, vector<6x1xf32>
    %cst_8 = arith.constant dense<0.000000e+00> : vector<6xf32>
    %10 = vector.multi_reduction <add>, %8, %cst_8 [1] : vector<6x392xf32> to vector<6xf32>
    %11 = vector.shape_cast %10 : vector<6xf32> to vector<6x1xf32>
    %12 = arith.addf %9, %11 : vector<6x1xf32>
    %c0_9 = arith.constant 0 : index
    %c0_10 = arith.constant 0 : index
    %13 = vector.load %arg7[%c0_9, %c0_10] : memref<6x1xf32, #tpu.memory_space<vmem>>, vector<6x1xf32>
    tpu.vector_store %arg7[%c0_9, %c0_10], %12 {strides = array<i32>} : memref<6x1xf32, #tpu.memory_space<vmem>>, vector<6x1xf32>,
    %c0_11 = arith.constant 0 : index
    %c0_12 = arith.constant 0 : index
    %14 = vector.load %arg8[%c0_11, %c0_12] : memref<6x1xf32, #tpu.memory_space<vmem>>, vector<6x1xf32>
    %15 = arith.mulf %8, %8 : vector<6x392xf32>
    %cst_13 = arith.constant dense<0.000000e+00> : vector<6xf32>
    %16 = vector.multi_reduction <add>, %15, %cst_13 [1] : vector<6x392xf32> to vector<6xf32>
    %17 = vector.shape_cast %16 : vector<6xf32> to vector<6x1xf32>
    %18 = arith.addf %14, %17 : vector<6x1xf32>
    %c0_14 = arith.constant 0 : index
    %c0_15 = arith.constant 0 : index
    %19 = vector.load %arg8[%c0_14, %c0_15] : memref<6x1xf32, #tpu.memory_space<vmem>>, vector<6x1xf32>
    tpu.vector_store %arg8[%c0_14, %c0_15], %18 {strides = array<i32>} : memref<6x1xf32, #tpu.memory_space<vmem>>, vector<6x1xf32>,
    %c0_16 = arith.constant 0 : index
    %c0_17 = arith.constant 0 : index
    %20 = vector.load %arg6[%c0_16, %c0_17] : memref<6x392xf32, #tpu.memory_space<vmem>>, vector<6x392xf32>
    tpu.vector_store %arg6[%c0_16, %c0_17], %8 {strides = array<i32>} : memref<6x392xf32, #tpu.memory_space<vmem>>, vector<6x392xf32>,
    %c0_i32_18 = arith.constant 0 : i32
    %21 = arith.cmpi eq, %arg0, %c0_i32_18 : i32
    %22 = arith.extui %21 : i1 to i32
    %c0_i32_19 = arith.constant 0 : i32
    %23 = arith.cmpi ne, %22, %c0_i32_19 : i32
    scf.if %23 {
      %c0_20 = arith.constant 0 : index
      %c0_21 = arith.constant 0 : index
      %24 = vector.load %arg2[%c0_20, %c0_21] : memref<6x1xf32, #tpu.memory_space<vmem>>, vector<6x1xf32>
      %c0_22 = arith.constant 0 : index
      %c0_23 = arith.constant 0 : index
      %25 = vector.load %arg7[%c0_22, %c0_23] : memref<6x1xf32, #tpu.memory_space<vmem>>, vector<6x1xf32>
      %cst_24 = arith.constant 0.000000e+00 : f32
      %26 = vector.broadcast %cst_24 : f32 to vector<6x1xf32>
      %27 = arith.mulf %26, %24 : vector<6x1xf32>
      %28 = arith.subf %25, %27 : vector<6x1xf32>
      %c0_25 = arith.constant 0 : index
      %c0_26 = arith.constant 0 : index
      %29 = vector.load %arg8[%c0_25, %c0_26] : memref<6x1xf32, #tpu.memory_space<vmem>>, vector<6x1xf32>
      %cst_27 = arith.constant 0.000000e+00 : f32
      %30 = vector.broadcast %cst_27 : f32 to vector<6x1xf32>
      %31 = arith.mulf %30, %24 : vector<6x1xf32>
      %32 = arith.mulf %31, %24 : vector<6x1xf32>
      %33 = arith.subf %29, %32 : vector<6x1xf32>
      %cst_28 = arith.constant 0.00255102036 : f32
      %34 = vector.broadcast %cst_28 : f32 to vector<6x1xf32>
      %35 = arith.mulf %28, %34 : vector<6x1xf32>
      %cst_29 = arith.constant 0.00255102036 : f32
      %36 = vector.broadcast %cst_29 : f32 to vector<6x1xf32>
      %37 = arith.mulf %33, %36 : vector<6x1xf32>
      %38 = arith.mulf %35, %35 : vector<6x1xf32>
      %39 = arith.subf %37, %38 : vector<6x1xf32>
      %c0_30 = arith.constant 0 : index
      %c0_31 = arith.constant 0 : index
      %40 = vector.load %arg3[%c0_30, %c0_31] : memref<6x1xf32, #tpu.memory_space<vmem>>, vector<6x1xf32>
      %cst_32 = arith.constant 9.99999974E-6 : f32
      %41 = vector.broadcast %cst_32 : f32 to vector<6x1xf32>
      %42 = arith.addf %39, %41 : vector<6x1xf32>
      %43 = math.rsqrt %42 : vector<6x1xf32>
      %44 = arith.mulf %40, %43 : vector<6x1xf32>
      %c0_33 = arith.constant 0 : index
      %c0_34 = arith.constant 0 : index
      %45 = vector.load %arg4[%c0_33, %c0_34] : memref<6x1xf32, #tpu.memory_space<vmem>>, vector<6x1xf32>
      %46 = arith.mulf %35, %44 : vector<6x1xf32>
      %47 = arith.subf %45, %46 : vector<6x1xf32>
      %c0_35 = arith.constant 0 : index
      %c0_36 = arith.constant 0 : index
      %48 = vector.load %arg6[%c0_35, %c0_36] : memref<6x392xf32, #tpu.memory_space<vmem>>, vector<6x392xf32>
      %49 = vector.broadcast %44 : vector<6x1xf32> to vector<6x392xf32>
      %50 = arith.mulf %48, %49 : vector<6x392xf32>
      %51 = vector.broadcast %47 : vector<6x1xf32> to vector<6x392xf32>
      %52 = arith.addf %50, %51 : vector<6x392xf32>
      %cst_37 = arith.constant 0.000000e+00 : f32
      %53 = vector.broadcast %cst_37 : f32 to vector<6x392xf32>
      %54 = arith.maximumf %52, %53 : vector<6x392xf32>
      %c0_38 = arith.constant 0 : index
      %c0_39 = arith.constant 0 : index
      %55 = vector.load %arg6[%c0_38, %c0_39] : memref<6x392xf32, #tpu.memory_space<vmem>>, vector<6x392xf32>
      tpu.vector_store %arg6[%c0_38, %c0_39], %54 {strides = array<i32>} : memref<6x392xf32, #tpu.memory_space<vmem>>, vector<6x392xf32>,
    } else {
    }
    return
  }
  func.func @transform_0(%arg0: i32) -> (i32, i32) {
    %c0_i32 = arith.constant 0 : i32
    %c0_i32_0 = arith.constant 0 : i32
    %c0_i32_1 = arith.constant 0 : i32
    return %c0_i32, %c0_i32_0 : i32, i32
  }
  func.func @transform_1(%arg0: i32) -> (i32, i32) {
    %c0_i32 = arith.constant 0 : i32
    %c0_i32_0 = arith.constant 0 : i32
    %c0_i32_1 = arith.constant 0 : i32
    return %c0_i32, %c0_i32_0 : i32, i32
  }
  func.func @transform_2(%arg0: i32) -> (i32, i32) {
    %c0_i32 = arith.constant 0 : i32
    %c0_i32_0 = arith.constant 0 : i32
    %c0_i32_1 = arith.constant 0 : i32
    return %c0_i32, %c0_i32_0 : i32, i32
  }
  func.func @transform_3(%arg0: i32) -> (i32, i32) {
    %c0_i32 = arith.constant 0 : i32
    %c0_i32_0 = arith.constant 0 : i32
    %c0_i32_1 = arith.constant 0 : i32
    return %c0_i32, %c0_i32_0 : i32, i32
  }
  func.func @transform_4(%arg0: i32) -> (i32, i32) {
    %c0_i32 = arith.constant 0 : i32
    %c0_i32_0 = arith.constant 0 : i32
    return %c0_i32, %arg0 : i32, i32
  }
  func.func @transform_5(%arg0: i32) -> (i32, i32) {
    %c0_i32 = arith.constant 0 : i32
    %c0_i32_0 = arith.constant 0 : i32
    %c0_i32_1 = arith.constant 0 : i32
    return %c0_i32, %c0_i32_0 : i32, i32
  }
}

module attributes {stable_mosaic.version = 11 : i64} {
  func.func @kernel(%arg0: i32, %arg1: memref<16x54xbf16, #tpu.memory_space<vmem>>, %arg2: memref<16x1xf32, #tpu.memory_space<vmem>>, %arg3: memref<16x1xf32, #tpu.memory_space<vmem>>, %arg4: memref<16x1xf32, #tpu.memory_space<vmem>>, %arg5: memref<54x98xbf16, #tpu.memory_space<vmem>>, %arg6: memref<16x98xf32, #tpu.memory_space<vmem>>, %arg7: memref<16x1xf32, #tpu.memory_space<vmem>>, %arg8: memref<16x1xf32, #tpu.memory_space<vmem>>) attributes {dimension_semantics = [#tpu.dimension_semantics<arbitrary>], iteration_bounds = array<i64: 1>, scalar_prefetch = 0 : i64, scratch_operands = 2 : i64, tpu.core_type = #tpu.core_type<tc>, window_params = [{pipeline_mode = #tpu.pipeline_mode<synchronous>, transform_indices = @transform_0, window_bounds = array<i64: 16, 54>}, {pipeline_mode = #tpu.pipeline_mode<synchronous>, transform_indices = @transform_1, window_bounds = array<i64: 16, 1>}, {pipeline_mode = #tpu.pipeline_mode<synchronous>, transform_indices = @transform_2, window_bounds = array<i64: 16, 1>}, {pipeline_mode = #tpu.pipeline_mode<synchronous>, transform_indices = @transform_3, window_bounds = array<i64: 16, 1>}, {transform_indices = @transform_4, window_bounds = array<i64: 54, 98>}, {pipeline_mode = #tpu.pipeline_mode<synchronous>, transform_indices = @transform_5, window_bounds = array<i64: 16, 98>}]} {
    %c0_i32 = arith.constant 0 : i32
    %0 = arith.cmpi eq, %arg0, %c0_i32 : i32
    %1 = arith.extui %0 : i1 to i32
    %c0_i32_0 = arith.constant 0 : i32
    %2 = arith.cmpi ne, %1, %c0_i32_0 : i32
    scf.if %2 {
      %cst_20 = arith.constant 0.000000e+00 : f32
      %24 = vector.broadcast %cst_20 : f32 to vector<16x1xf32>
      %c0_21 = arith.constant 0 : index
      %c0_22 = arith.constant 0 : index
      %25 = vector.load %arg7[%c0_21, %c0_22] : memref<16x1xf32, #tpu.memory_space<vmem>>, vector<16x1xf32>
      tpu.vector_store %arg7[%c0_21, %c0_22], %24 {strides = array<i32>} : memref<16x1xf32, #tpu.memory_space<vmem>>, vector<16x1xf32>,
      %cst_23 = arith.constant 0.000000e+00 : f32
      %26 = vector.broadcast %cst_23 : f32 to vector<16x1xf32>
      %c0_24 = arith.constant 0 : index
      %c0_25 = arith.constant 0 : index
      %27 = vector.load %arg8[%c0_24, %c0_25] : memref<16x1xf32, #tpu.memory_space<vmem>>, vector<16x1xf32>
      tpu.vector_store %arg8[%c0_24, %c0_25], %26 {strides = array<i32>} : memref<16x1xf32, #tpu.memory_space<vmem>>, vector<16x1xf32>,
    } else {
    }
    %c0 = arith.constant 0 : index
    %c0_1 = arith.constant 0 : index
    %3 = vector.load %arg1[%c0, %c0_1] : memref<16x54xbf16, #tpu.memory_space<vmem>>, vector<16x54xbf16>
    %c0_2 = arith.constant 0 : index
    %c0_3 = arith.constant 0 : index
    %4 = vector.load %arg5[%c0_2, %c0_3] : memref<54x98xbf16, #tpu.memory_space<vmem>>, vector<54x98xbf16>
    %cst = arith.constant dense<0.000000e+00> : vector<16x98xf32>
    %5 = tpu.matmul %3, %4, %cst {dimension_numbers = #tpu.dot_dimension_numbers<[1], [0], [0], [1], [0, 0, 1, 1], [], []>} : vector<16x54xbf16>, vector<54x98xbf16>, vector<16x98xf32> -> vector<16x98xf32>
    %c0_4 = arith.constant 0 : index
    %c0_5 = arith.constant 0 : index
    %6 = vector.load %arg2[%c0_4, %c0_5] : memref<16x1xf32, #tpu.memory_space<vmem>>, vector<16x1xf32>
    %7 = vector.broadcast %6 : vector<16x1xf32> to vector<16x98xf32>
    %8 = arith.addf %5, %7 : vector<16x98xf32>
    %c0_6 = arith.constant 0 : index
    %c0_7 = arith.constant 0 : index
    %9 = vector.load %arg7[%c0_6, %c0_7] : memref<16x1xf32, #tpu.memory_space<vmem>>, vector<16x1xf32>
    %cst_8 = arith.constant dense<0.000000e+00> : vector<16xf32>
    %10 = vector.multi_reduction <add>, %8, %cst_8 [1] : vector<16x98xf32> to vector<16xf32>
    %11 = vector.shape_cast %10 : vector<16xf32> to vector<16x1xf32>
    %12 = arith.addf %9, %11 : vector<16x1xf32>
    %c0_9 = arith.constant 0 : index
    %c0_10 = arith.constant 0 : index
    %13 = vector.load %arg7[%c0_9, %c0_10] : memref<16x1xf32, #tpu.memory_space<vmem>>, vector<16x1xf32>
    tpu.vector_store %arg7[%c0_9, %c0_10], %12 {strides = array<i32>} : memref<16x1xf32, #tpu.memory_space<vmem>>, vector<16x1xf32>,
    %c0_11 = arith.constant 0 : index
    %c0_12 = arith.constant 0 : index
    %14 = vector.load %arg8[%c0_11, %c0_12] : memref<16x1xf32, #tpu.memory_space<vmem>>, vector<16x1xf32>
    %15 = arith.mulf %8, %8 : vector<16x98xf32>
    %cst_13 = arith.constant dense<0.000000e+00> : vector<16xf32>
    %16 = vector.multi_reduction <add>, %15, %cst_13 [1] : vector<16x98xf32> to vector<16xf32>
    %17 = vector.shape_cast %16 : vector<16xf32> to vector<16x1xf32>
    %18 = arith.addf %14, %17 : vector<16x1xf32>
    %c0_14 = arith.constant 0 : index
    %c0_15 = arith.constant 0 : index
    %19 = vector.load %arg8[%c0_14, %c0_15] : memref<16x1xf32, #tpu.memory_space<vmem>>, vector<16x1xf32>
    tpu.vector_store %arg8[%c0_14, %c0_15], %18 {strides = array<i32>} : memref<16x1xf32, #tpu.memory_space<vmem>>, vector<16x1xf32>,
    %c0_16 = arith.constant 0 : index
    %c0_17 = arith.constant 0 : index
    %20 = vector.load %arg6[%c0_16, %c0_17] : memref<16x98xf32, #tpu.memory_space<vmem>>, vector<16x98xf32>
    tpu.vector_store %arg6[%c0_16, %c0_17], %8 {strides = array<i32>} : memref<16x98xf32, #tpu.memory_space<vmem>>, vector<16x98xf32>,
    %c0_i32_18 = arith.constant 0 : i32
    %21 = arith.cmpi eq, %arg0, %c0_i32_18 : i32
    %22 = arith.extui %21 : i1 to i32
    %c0_i32_19 = arith.constant 0 : i32
    %23 = arith.cmpi ne, %22, %c0_i32_19 : i32
    scf.if %23 {
      %c0_20 = arith.constant 0 : index
      %c0_21 = arith.constant 0 : index
      %24 = vector.load %arg2[%c0_20, %c0_21] : memref<16x1xf32, #tpu.memory_space<vmem>>, vector<16x1xf32>
      %c0_22 = arith.constant 0 : index
      %c0_23 = arith.constant 0 : index
      %25 = vector.load %arg7[%c0_22, %c0_23] : memref<16x1xf32, #tpu.memory_space<vmem>>, vector<16x1xf32>
      %cst_24 = arith.constant 0.000000e+00 : f32
      %26 = vector.broadcast %cst_24 : f32 to vector<16x1xf32>
      %27 = arith.mulf %26, %24 : vector<16x1xf32>
      %28 = arith.subf %25, %27 : vector<16x1xf32>
      %c0_25 = arith.constant 0 : index
      %c0_26 = arith.constant 0 : index
      %29 = vector.load %arg8[%c0_25, %c0_26] : memref<16x1xf32, #tpu.memory_space<vmem>>, vector<16x1xf32>
      %cst_27 = arith.constant 0.000000e+00 : f32
      %30 = vector.broadcast %cst_27 : f32 to vector<16x1xf32>
      %31 = arith.mulf %30, %24 : vector<16x1xf32>
      %32 = arith.mulf %31, %24 : vector<16x1xf32>
      %33 = arith.subf %29, %32 : vector<16x1xf32>
      %cst_28 = arith.constant 0.0102040814 : f32
      %34 = vector.broadcast %cst_28 : f32 to vector<16x1xf32>
      %35 = arith.mulf %28, %34 : vector<16x1xf32>
      %cst_29 = arith.constant 0.0102040814 : f32
      %36 = vector.broadcast %cst_29 : f32 to vector<16x1xf32>
      %37 = arith.mulf %33, %36 : vector<16x1xf32>
      %38 = arith.mulf %35, %35 : vector<16x1xf32>
      %39 = arith.subf %37, %38 : vector<16x1xf32>
      %c0_30 = arith.constant 0 : index
      %c0_31 = arith.constant 0 : index
      %40 = vector.load %arg3[%c0_30, %c0_31] : memref<16x1xf32, #tpu.memory_space<vmem>>, vector<16x1xf32>
      %cst_32 = arith.constant 9.99999974E-6 : f32
      %41 = vector.broadcast %cst_32 : f32 to vector<16x1xf32>
      %42 = arith.addf %39, %41 : vector<16x1xf32>
      %43 = math.rsqrt %42 : vector<16x1xf32>
      %44 = arith.mulf %40, %43 : vector<16x1xf32>
      %c0_33 = arith.constant 0 : index
      %c0_34 = arith.constant 0 : index
      %45 = vector.load %arg4[%c0_33, %c0_34] : memref<16x1xf32, #tpu.memory_space<vmem>>, vector<16x1xf32>
      %46 = arith.mulf %35, %44 : vector<16x1xf32>
      %47 = arith.subf %45, %46 : vector<16x1xf32>
      %c0_35 = arith.constant 0 : index
      %c0_36 = arith.constant 0 : index
      %48 = vector.load %arg6[%c0_35, %c0_36] : memref<16x98xf32, #tpu.memory_space<vmem>>, vector<16x98xf32>
      %49 = vector.broadcast %44 : vector<16x1xf32> to vector<16x98xf32>
      %50 = arith.mulf %48, %49 : vector<16x98xf32>
      %51 = vector.broadcast %47 : vector<16x1xf32> to vector<16x98xf32>
      %52 = arith.addf %50, %51 : vector<16x98xf32>
      %cst_37 = arith.constant 0.000000e+00 : f32
      %53 = vector.broadcast %cst_37 : f32 to vector<16x98xf32>
      %54 = arith.maximumf %52, %53 : vector<16x98xf32>
      %c0_38 = arith.constant 0 : index
      %c0_39 = arith.constant 0 : index
      %55 = vector.load %arg6[%c0_38, %c0_39] : memref<16x98xf32, #tpu.memory_space<vmem>>, vector<16x98xf32>
      tpu.vector_store %arg6[%c0_38, %c0_39], %54 {strides = array<i32>} : memref<16x98xf32, #tpu.memory_space<vmem>>, vector<16x98xf32>,
    } else {
    }
    return
  }
  func.func @transform_0(%arg0: i32) -> (i32, i32) {
    %c0_i32 = arith.constant 0 : i32
    %c0_i32_0 = arith.constant 0 : i32
    %c0_i32_1 = arith.constant 0 : i32
    return %c0_i32, %c0_i32_0 : i32, i32
  }
  func.func @transform_1(%arg0: i32) -> (i32, i32) {
    %c0_i32 = arith.constant 0 : i32
    %c0_i32_0 = arith.constant 0 : i32
    %c0_i32_1 = arith.constant 0 : i32
    return %c0_i32, %c0_i32_0 : i32, i32
  }
  func.func @transform_2(%arg0: i32) -> (i32, i32) {
    %c0_i32 = arith.constant 0 : i32
    %c0_i32_0 = arith.constant 0 : i32
    %c0_i32_1 = arith.constant 0 : i32
    return %c0_i32, %c0_i32_0 : i32, i32
  }
  func.func @transform_3(%arg0: i32) -> (i32, i32) {
    %c0_i32 = arith.constant 0 : i32
    %c0_i32_0 = arith.constant 0 : i32
    %c0_i32_1 = arith.constant 0 : i32
    return %c0_i32, %c0_i32_0 : i32, i32
  }
  func.func @transform_4(%arg0: i32) -> (i32, i32) {
    %c0_i32 = arith.constant 0 : i32
    %c0_i32_0 = arith.constant 0 : i32
    return %c0_i32, %arg0 : i32, i32
  }
  func.func @transform_5(%arg0: i32) -> (i32, i32) {
    %c0_i32 = arith.constant 0 : i32
    %c0_i32_0 = arith.constant 0 : i32
    %c0_i32_1 = arith.constant 0 : i32
    return %c0_i32, %c0_i32_0 : i32, i32
  }
}

module attributes {stable_mosaic.version = 11 : i64} {
  func.func @head_kernel(%arg0: i32, %arg1: memref<784x32xf32, #tpu.memory_space<vmem>>, %arg2: memref<1x32xf32, #tpu.memory_space<vmem>>, %arg3: memref<32x128xf32, #tpu.memory_space<vmem>>, %arg4: memref<1x128xf32, #tpu.memory_space<vmem>>, %arg5: memref<2x784xf32, #tpu.memory_space<vmem>>, %arg6: memref<2x128xf32, #tpu.memory_space<vmem>>) attributes {dimension_semantics = [#tpu.dimension_semantics<parallel>], iteration_bounds = array<i64: 1>, scalar_prefetch = 0 : i64, scratch_operands = 0 : i64, tpu.core_type = #tpu.core_type<tc>, window_params = [{pipeline_mode = #tpu.pipeline_mode<synchronous>, transform_indices = @transform_0, window_bounds = array<i64: 784, 32>}, {pipeline_mode = #tpu.pipeline_mode<synchronous>, transform_indices = @transform_1, window_bounds = array<i64: 1, 32>}, {pipeline_mode = #tpu.pipeline_mode<synchronous>, transform_indices = @transform_2, window_bounds = array<i64: 32, 128>}, {pipeline_mode = #tpu.pipeline_mode<synchronous>, transform_indices = @transform_3, window_bounds = array<i64: 1, 128>}, {transform_indices = @transform_4, window_bounds = array<i64: 2, 784>}, {transform_indices = @transform_5, window_bounds = array<i64: 2, 128>}]} {
    %c0 = arith.constant 0 : index
    %c0_0 = arith.constant 0 : index
    %0 = vector.load %arg5[%c0, %c0_0] : memref<2x784xf32, #tpu.memory_space<vmem>>, vector<2x784xf32>
    %c0_1 = arith.constant 0 : index
    %c0_2 = arith.constant 0 : index
    %1 = vector.load %arg1[%c0_1, %c0_2] : memref<784x32xf32, #tpu.memory_space<vmem>>, vector<784x32xf32>
    %cst = arith.constant dense<0.000000e+00> : vector<2x32xf32>
    %2 = tpu.matmul %0, %1, %cst {dimension_numbers = #tpu.dot_dimension_numbers<[1], [0], [0], [1], [0, 0, 1, 1], [], []>} : vector<2x784xf32>, vector<784x32xf32>, vector<2x32xf32> -> vector<2x32xf32>
    %c0_3 = arith.constant 0 : index
    %c0_4 = arith.constant 0 : index
    %3 = vector.load %arg2[%c0_3, %c0_4] : memref<1x32xf32, #tpu.memory_space<vmem>>, vector<1x32xf32>
    %4 = vector.broadcast %3 : vector<1x32xf32> to vector<2x32xf32>
    %5 = arith.addf %2, %4 : vector<2x32xf32>
    %c0_5 = arith.constant 0 : index
    %c0_6 = arith.constant 0 : index
    %6 = vector.load %arg3[%c0_5, %c0_6] : memref<32x128xf32, #tpu.memory_space<vmem>>, vector<32x128xf32>
    %cst_7 = arith.constant dense<0.000000e+00> : vector<2x128xf32>
    %7 = tpu.matmul %5, %6, %cst_7 {dimension_numbers = #tpu.dot_dimension_numbers<[1], [0], [0], [1], [0, 0, 1, 1], [], []>} : vector<2x32xf32>, vector<32x128xf32>, vector<2x128xf32> -> vector<2x128xf32>
    %c0_8 = arith.constant 0 : index
    %c0_9 = arith.constant 0 : index
    %8 = vector.load %arg4[%c0_8, %c0_9] : memref<1x128xf32, #tpu.memory_space<vmem>>, vector<1x128xf32>
    %9 = vector.broadcast %8 : vector<1x128xf32> to vector<2x128xf32>
    %10 = arith.addf %7, %9 : vector<2x128xf32>
    %cst_10 = arith.constant dense<0xFF800000> : vector<2xf32>
    %11 = vector.multi_reduction <maximumf>, %10, %cst_10 [1] : vector<2x128xf32> to vector<2xf32>
    %12 = vector.shape_cast %11 : vector<2xf32> to vector<2x1xf32>
    %13 = vector.broadcast %12 : vector<2x1xf32> to vector<2x128xf32>
    %14 = arith.subf %10, %13 : vector<2x128xf32>
    %15 = math.exp %14 : vector<2x128xf32>
    %cst_11 = arith.constant dense<0.000000e+00> : vector<2xf32>
    %16 = vector.multi_reduction <add>, %15, %cst_11 [1] : vector<2x128xf32> to vector<2xf32>
    %17 = vector.shape_cast %16 : vector<2xf32> to vector<2x1xf32>
    %18 = math.log %17 : vector<2x1xf32>
    %19 = vector.broadcast %18 : vector<2x1xf32> to vector<2x128xf32>
    %20 = arith.subf %14, %19 : vector<2x128xf32>
    %c0_12 = arith.constant 0 : index
    %c0_13 = arith.constant 0 : index
    %21 = vector.load %arg6[%c0_12, %c0_13] : memref<2x128xf32, #tpu.memory_space<vmem>>, vector<2x128xf32>
    tpu.vector_store %arg6[%c0_12, %c0_13], %20 {strides = array<i32>} : memref<2x128xf32, #tpu.memory_space<vmem>>, vector<2x128xf32>,
    return
  }
  func.func @transform_0(%arg0: i32) -> (i32, i32) {
    %c0_i32 = arith.constant 0 : i32
    %c0_i32_0 = arith.constant 0 : i32
    %c0_i32_1 = arith.constant 0 : i32
    return %c0_i32, %c0_i32_0 : i32, i32
  }
  func.func @transform_1(%arg0: i32) -> (i32, i32) {
    %c0_i32 = arith.constant 0 : i32
    %c0_i32_0 = arith.constant 0 : i32
    %c0_i32_1 = arith.constant 0 : i32
    return %c0_i32, %c0_i32_0 : i32, i32
  }
  func.func @transform_2(%arg0: i32) -> (i32, i32) {
    %c0_i32 = arith.constant 0 : i32
    %c0_i32_0 = arith.constant 0 : i32
    %c0_i32_1 = arith.constant 0 : i32
    return %c0_i32, %c0_i32_0 : i32, i32
  }
  func.func @transform_3(%arg0: i32) -> (i32, i32) {
    %c0_i32 = arith.constant 0 : i32
    %c0_i32_0 = arith.constant 0 : i32
    %c0_i32_1 = arith.constant 0 : i32
    return %c0_i32, %c0_i32_0 : i32, i32
  }
  func.func @transform_4(%arg0: i32) -> (i32, i32) {
    %c0_i32 = arith.constant 0 : i32
    %c0_i32_0 = arith.constant 0 : i32
    return %arg0, %c0_i32 : i32, i32
  }
  func.func @transform_5(%arg0: i32) -> (i32, i32) {
    %c0_i32 = arith.constant 0 : i32
    %c0_i32_0 = arith.constant 0 : i32
    return %arg0, %c0_i32 : i32, i32
  }
}

</mosaic_0001>

<bundles_post_ra>
// kernel: net_forward.4
= control target key start
LH: loop header
LB: loop body
LE: loop exit
PB: predicated region body
PF: predicated region fallthrough
CT: control target
= control target key end

     0   :  { %vm81_vm0 = vcmask 1042432   ;;  %v266_v0 = vmov 0.0   ;;  %vm267_vm1 = vmmov 0   ;;  %v268_v4 = vmov 0   ;;  %s371_s4 = inlined_call_operand.vmem [shape: bf16[54,98], index: 4, kind: input, shape index: {}]   ;;  %s372_s1 = inlined_call_operand.vmem [shape: f32[16,1], index: 1, kind: input, shape index: {}]   ;;  %s373_s0 = inlined_call_operand.vmem [shape: bf16[16,54], index: 0, kind: input, shape index: {}]   ;;  %s374_s5 = inlined_call_operand.vmem [shape: f32[16,98], index: 5, kind: output, shape index: {}]   ;;  %s375_s2 = inlined_call_operand.vmem [shape: f32[16,1], index: 2, kind: input, shape index: {}]   ;;  %s376_s3 = inlined_call_operand.vmem [shape: f32[16,1], index: 3, kind: input, shape index: {}]  }
   0x1   :  { %240 = vmatprep.subr.bf16.mxu0 %v266_v0  ;;  %v257_v1 = vld [vmem:[%s371_s4 + $0x18] ss:$0 sps:$4 sm:$0x77]   ;;  %248 = vmatprep.mubr.msk.bf16.mxu0 %vm267_vm1, %v266_v0  ;;  %v258_v3 = vld [vmem:[%s371_s4 + $0x10] sm:$0xff]   ;;  %v39_v5 = vld [vmem:[%s372_s1] sm:$0xff]  ;;  %vm77_vm2 = vcmask 441344  }
   0x2   :  { %v83_v2 = vsel %vm81_vm0, %v257_v1, 0  ;;  %255 = vset.pattern.permute.xlu0 %v268_v4  ;;  %256 = vset.pattern.permute.xlu1 %v268_v4  ;;  %v311_v6 = vld [vmem:[%s372_s1 + $0x8] sm:$0xff]  ;;  %v260_v8 = vld [vmem:[%s371_s4] sm:$0xff]   ;;  %vm25_vm3 = vcmask 7168   ;;  %vm128_vm4 = vcmask 801792   ;;  %v163_v32 = vmul.f32 0.0, %v39_v5 }
   0x3   :  { %241 = vmatpush3.bf16.msra.mxu0 %v83_v2  ;;  %43 = vperm.xlu0 %255, %v39_v5   ;;  %v259_v7 = vld [vmem:[%s371_s4 + $0x8] sm:$0xff]   ;;  %v261_v9 = vld [vmem:[%s373_s0] sm:$0xff]   ;;  %26 = vst.msk [vmem:[#allocation2] sm:$0xff] %vm25_vm3, %v266_v0  ;;  %27 = vst.msk [vmem:[#allocation2 + $0x8] sm:$0xff] %vm25_vm3, %v266_v0  ;;  %v164_v39 = vmul.f32 0.0, %v311_v6 }
   0x4   :  { %242 = vmatprep.subr.bf16.mxu0 %v266_v0  ;;  %28 = vst.msk [vmem:[#allocation3] sm:$0xff] %vm25_vm3, %v266_v0  ;;  %29 = vst.msk [vmem:[#allocation3 + $0x8] sm:$0xff] %vm25_vm3, %v266_v0  ;;  %v169_v36 = vmul.f32 %v163_v32, %v39_v5  ;;  %v181_v58 = vld [vmem:[%s375_s2] sm:$0xff]  ;;  %v182_v61 = vld [vmem:[%s375_s2 + $0x8] sm:$0xff] }
   0x5   :  { %v170_v45 = vmul.f32 %v164_v39, %v311_v6  ;;  %v189_v1 = vld [vmem:[%s376_s3] sm:$0xff]  ;;  %v190_v4 = vld [vmem:[%s376_s3 + $0x8] sm:$0xff] }
   0x7   :  { %243 = vmatpush3.bf16.msra.mxu0 %v258_v3  ;;  %48 = vperm.xlu0 %255, %v311_v6  }
   0x8   :  { %244 = vmatprep.subr.bf16.mxu0 %v266_v0 }
   0xa   :  { %v126_v24 = vld [vmem:[#allocation2] sm:$0xff]  ;;  %v127_v29 = vld [vmem:[#allocation2 + $0x8] sm:$0xff] }
   0xb   :  { %245 = vmatpush3.bf16.msra.mxu0 %v259_v7  ;;  %v140_v26 = vld [vmem:[#allocation3] sm:$0xff]  ;;  %v141_v34 = vld [vmem:[#allocation3 + $0x8] sm:$0xff] }
   0xc   :  { %246 = vmatprep.subr.bf16.mxu0 %v266_v0 }
   0xf   :  { %247 = vmatpush3.bf16.msra.mxu0 %v260_v8 }
  0x12   :  { %249 = vmatmul.mubr.msk.bf16.vlgmr.msra.gmra.mxu0 %vm77_vm2, %v261_v9 }
  0x7e   :  { %v44_v10 = vpop.permute.xlu0 %43 }
  0x82   :  { %v49_v16 = vpop.permute.xlu0 %48 }
  0xd2   :  { %v119_v11 = vpop.f32.mrf.mxu0 }
  0xd3   :  { %v120_v12 = vadd.f32 %v119_v11, %v44_v10 }
  0xd4   :  { %v250_v13 = vpop.f32.mrf.mxu0 }
  0xd5   :  { %154 = vst.msk [vmem:[%s374_s5] sm:$0xff] %vm128_vm4, %v120_v12  ;;  %v129_v14 = vsel %vm128_vm4, %v120_v12, 0.0  ;;  %v142_v15 = vmul.f32 %v120_v12, %v120_v12 }
  0xd6   :  { %130 = vadd.xlane.f32.xlu1 %v129_v14  ;;  %v122_v17 = vpop.f32.mrf.mxu0 }
  0xd7   :  { %v123_v18 = vadd.f32 %v122_v17, %v49_v16  ;;  %v144_v19 = vsel %vm128_vm4, %v142_v15, 0.0 }
  0xd8   :  { %145 = vadd.xlane.f32.xlu0 %v144_v19  ;;  %v251_v20 = vpop.f32.mrf.mxu0 }
  0xd9   :  { %155 = vst.msk [vmem:[%s374_s5 + $0x8] sm:$0xff] %vm128_vm4, %v123_v18  ;;  %v132_v21 = vsel %vm128_vm4, %v123_v18, 0.0  ;;  %v143_v22 = vmul.f32 %v123_v18, %v123_v18 }
  0xda   :  { %133 = vadd.xlane.f32.xlu1 %v132_v21 }
  0xdb   :  { %v147_v23 = vsel %vm128_vm4, %v143_v22, 0.0 }
  0xdc   :  { %v195_v8 = vld [vmem:[%s374_s5] sm:$0xff] }
  0xde   :  { %148 = vadd.xlane.f32.xlu1 %v147_v23 }
  0xe0   :  { %v196_v12 = vld [vmem:[%s374_s5 + $0x8] sm:$0xff] }
 0x15f   :  { %v131_v25 = vpop.xlane.xlu1 %130 }
 0x160   :  { %v135_v27 = vadd.f32 %v131_v25, %v126_v24 }
 0x161   :  { %v146_v28 = vpop.xlane.xlu0 %145 }
 0x162   :  { %138 = vst.msk [vmem:[#allocation2] sm:$0xff] %vm25_vm3, %v135_v27  ;;  %v150_v30 = vadd.f32 %v146_v28, %v140_v26 }
 0x163   :  { %v134_v31 = vpop.xlane.xlu1 %133 }
 0x164   :  { %152 = vst.msk [vmem:[#allocation3] sm:$0xff] %vm25_vm3, %v150_v30  ;;  %v136_v33 = vadd.f32 %v134_v31, %v127_v29 }
 0x166   :  { %139 = vst.msk [vmem:[#allocation2 + $0x8] sm:$0xff] %vm25_vm3, %v136_v33 }
 0x167   :  { %v149_v35 = vpop.xlane.xlu1 %148 }
 0x168   :  { %v151_v37 = vadd.f32 %v149_v35, %v141_v34 }
 0x169   :  { %v161_v38 = vld [vmem:[#allocation2] sm:$0xff] }
 0x16a   :  { %153 = vst.msk [vmem:[#allocation3 + $0x8] sm:$0xff] %vm25_vm3, %v151_v37  ;;  %v165_v40 = vsub.f32 %v161_v38, %v163_v32 }
 0x16b   :  { %v167_v41 = vld [vmem:[#allocation3] sm:$0xff] }
 0x16c   :  { %v171_v42 = vsub.f32 %v167_v41, %v169_v36  ;;  %v173_v43 = vmul.f32 0.010204081, %v165_v40 }
 0x16d   :  { %v162_v44 = vld [vmem:[#allocation2 + $0x8] sm:$0xff] }
 0x16e   :  { %v175_v46 = vmul.f32 0.010204081, %v171_v42  ;;  %v177_v47 = vmul.f32 %v173_v43, %v173_v43  ;;  %v166_v48 = vsub.f32 %v162_v44, %v164_v39 }
 0x170   :  { %v179_v49 = vsub.f32 %v175_v46, %v177_v47  ;;  %v174_v50 = vmul.f32 0.010204081, %v166_v48 }
 0x171   :  { %v168_v51 = vld [vmem:[#allocation3 + $0x8] sm:$0xff] }
 0x172   :  { %v183_v52 = vadd.f32 1e-05, %v179_v49  ;;  %v172_v53 = vsub.f32 %v168_v51, %v170_v45  ;;  %v178_v55 = vmul.f32 %v174_v50, %v174_v50 }
 0x174   :  { %262 = vrsqrt.f32 %v183_v52  ;;  %v176_v54 = vmul.f32 0.010204081, %v172_v53 }
 0x176   :  { %v180_v56 = vsub.f32 %v176_v54, %v178_v55 }
 0x178   :  { %v184_v57 = vadd.f32 1e-05, %v180_v56 }
 0x17a   :  { %264 = vrsqrt.f32 %v184_v57 }
 0x181   :  { %v263_v59 = vpop.eup %262 }
 0x182   :  { %v187_v60 = vmul.f32 %v263_v59, %v181_v58 }
 0x184   :  { %199 = vperm.xlu1 %256, %v187_v60   ;;  %v191_v0 = vmul.f32 %v187_v60, %v173_v43 }
 0x186   :  { %v193_v2 = vsub.f32 %v189_v1, %v191_v0 }
 0x187   :  { %v265_v62 = vpop.eup %264 }
 0x188   :  { %v188_v63 = vmul.f32 %v265_v62, %v182_v61 }
 0x18a   :  { %204 = vperm.xlu1 %256, %v188_v63   ;;  %v192_v3 = vmul.f32 %v188_v63, %v174_v50 }
 0x18c   :  { %v194_v5 = vsub.f32 %v190_v4, %v192_v3 }
 0x18e   :  { %211 = vperm.xlu1 %256, %v193_v2  }
 0x192   :  { %216 = vperm.xlu1 %256, %v194_v5  }
 0x1ff   :  { %v200_v6 = vpop.permute.xlu1 %199 }
 0x200   :  { %v207_v9 = vmul.f32 %v200_v6, %v195_v8 }
 0x205   :  { %v205_v7 = vpop.permute.xlu1 %204 }
 0x206   :  { %v208_v13 = vmul.f32 %v205_v7, %v196_v12 }
 0x209   :  { %v212_v10 = vpop.permute.xlu1 %211 }
 0x20a   :  { %v219_v11 = vadd.f32 %v212_v10, %v207_v9 }
 0x20c   :  { %v221_v14 = vmax.f32 %v219_v11, 0.0 }
 0x20d   :  { %v217_v15 = vpop.permute.xlu1 %216 }
 0x20e   :  { %223 = vst.msk [vmem:[%s374_s5] sm:$0xff] %vm128_vm4, %v221_v14  ;;  %v220_v16 = vadd.f32 %v217_v15, %v208_v13 }
 0x210   :  { %v222_v17 = vmax.f32 %v220_v16, 0.0 }
 0x212   :  { %224 = vst.msk [vmem:[%s374_s5 + $0x8] sm:$0xff] %vm128_vm4, %v222_v17 }

// kernel: net_forward.3
= control target key start
LH: loop header
LB: loop body
LE: loop exit
PB: predicated region body
PF: predicated region fallthrough
CT: control target
= control target key end

     0   :  { %vm59_vm0 = vcmask 1043456   ;;  %vm60_vm1 = vcmask 1044480   ;;  %v266_v1 = vmov 0   ;;  %v267_v2 = vmov 65535   ;;  %s376_s4 = inlined_call_operand.vmem [shape: bf16[9,392], index: 4, kind: input, shape index: {}]   ;;  %s377_s1 = inlined_call_operand.vmem [shape: f32[6,1], index: 1, kind: input, shape index: {}]   ;;  %s378_s0 = inlined_call_operand.vmem [shape: bf16[6,9], index: 0, kind: input, shape index: {}]   ;;  %s379_s5 = inlined_call_operand.vmem [shape: f32[6,392], index: 5, kind: output, shape index: {}]   ;;  %s380_s2 = inlined_call_operand.vmem [shape: f32[6,1], index: 2, kind: input, shape index: {}]   ;;  %s381_s3 = inlined_call_operand.vmem [shape: f32[6,1], index: 3, kind: input, shape index: {}]  }
   0x1   :  { %v258_v0 = vld [vmem:[%s376_s4 + $0x4] ss:$16 sps:$4 sm:$0x1f]   ;;  %107 = vmatprep.mubr.bf16.mxu0 %v266_v1  ;;  %148 = vmatprep.mubr.bf16.mxu1 %v266_v1  ;;  %v61_v3 = vsel %vm59_vm0, 4294967295, %v267_v2  ;;  %v28_v13 = vld [vmem:[%s378_s0] sm:$0x7] }
   0x2   :  { %256 = vset.pattern.permute.xlu0 %v266_v1  ;;  %257 = vset.pattern.permute.xlu1 %v266_v1  ;;  %v62_v4 = vsel %vm60_vm1, %v61_v3, 0  ;;  %v260_v5 = vld [vmem:[%s376_s4 + $0xc] ss:$16 sps:$4 sm:$0x1f]   ;;  %v33_v10 = vld [vmem:[%s377_s1] sm:$0x3f] }
   0x3   :  { %v67_v6 = vand.u32 %v258_v0, %v62_v4  ;;  %v262_v7 = vld [vmem:[%s376_s4] ss:$16 sps:$4 sm:$0x1f]   ;;  %v263_v8 = vld [vmem:[%s376_s4 + $0x8] ss:$16 sps:$4 sm:$0x1f]   ;;  %v73_v9 = vand.u32 %v260_v5, %v62_v4  ;;  %36 = vperm.xlu0 %256, %v33_v10  }
   0x4   :  { %v64_v11 = vand.u32 %v262_v7, %v62_v4  ;;  %v70_v12 = vand.u32 %v263_v8, %v62_v4  ;;  %vm55_vm2 = vcmask 72704   ;;  %vm25_vm3 = vcmask 5120   ;;  %v195_v50 = vld [vmem:[%s377_s1] sm:$0x3f] }
   0x5   :  { %89 = vmatprep.subr.bf16.mxu0 %v67_v6  ;;  %130 = vmatprep.subr.bf16.mxu1 %v73_v9  ;;  %v268_v14 = vmov 0.0   ;;  %vm158_vm4 = vcmask 1045504   ;;  %vm164_vm5 = vcmask 62464   ;;  %v197_v53 = vmul.f32 0.0, %v195_v50  ;;  %v206_v0 = vld [vmem:[%s380_s2] sm:$0x3f] }
   0x6   :  { %90 = vmatpush1.bf16.msra.mxu0 %v64_v11  ;;  %131 = vmatpush1.bf16.msra.mxu1 %v70_v12  ;;  %26 = vst.msk [vmem:[#allocation2] sm:$0x3f] %vm25_vm3, %v268_v14  ;;  %27 = vst.msk [vmem:[#allocation3] sm:$0x3f] %vm25_vm3, %v268_v14  ;;  %v210_v3 = vld [vmem:[%s381_s3] sm:$0x3f] }
   0x7   :  { %v200_v54 = vmul.f32 %v197_v53, %v195_v50 }
   0x9   :  { %251 = vmatmul.mubr.msk.bf16.vlgmr.msra.gmra.mxu0 %vm55_vm2, %v28_v13  ;;  %252 = vmatmul.mubr.msk.bf16.vlgmr.msra.gmra.mxu1 %vm55_vm2, %v28_v13 }
   0xd   :  { %v157_v46 = vld [vmem:[#allocation2] sm:$0x3f]  ;;  %v172_v48 = vld [vmem:[#allocation3] sm:$0x3f] }
  0x7e   :  { %v37_v15 = vpop.permute.xlu0 %36 }
  0xc9   :  { %v109_v16 = vpop.f32.mrf.mxu0  ;;  %v150_v17 = vpop.f32.mrf.mxu1 }
  0xca   :  { %v110_v18 = vadd.f32 %v109_v16, %v37_v15  ;;  %v151_v19 = vadd.f32 %v150_v17, %v37_v15 }
  0xcb   :  { %v111_v20 = vpop.f32.mrf.mxu0  ;;  %v152_v21 = vpop.f32.mrf.mxu1 }
  0xcc   :  { %v173_v22 = vmul.f32 %v110_v18, %v110_v18  ;;  %188 = vst [vmem:[%s379_s5] sm:$0x3f] %v110_v18  ;;  %190 = vst [vmem:[%s379_s5 + $0x10] sm:$0x3f] %v151_v19  ;;  %v112_v23 = vadd.f32 %v111_v20, %v37_v15  ;;  %v153_v24 = vadd.f32 %v152_v21, %v37_v15  ;;  %v159_v27 = vsel %vm158_vm4, %v110_v18, 0.0 }
  0xcd   :  { %v113_v25 = vpop.f32.mrf.mxu0  ;;  %v154_v26 = vpop.f32.mrf.mxu1  ;;  %v175_v30 = vmul.f32 %v151_v19, %v151_v19  ;;  %v162_v34 = vsel %vm158_vm4, %v151_v19, 0.0 }
  0xce   :  { %v160_v28 = vsel %vm158_vm4, %v112_v23, 0.0  ;;  %v174_v29 = vmul.f32 %v112_v23, %v112_v23  ;;  %189 = vst [vmem:[%s379_s5 + $0x8] sm:$0x3f] %v112_v23  ;;  %191 = vst.msk [vmem:[%s379_s5 + $0x18] sm:$0x3f] %vm164_vm5, %v153_v24  ;;  %v176_v35 = vmul.f32 %v153_v24, %v153_v24  ;;  %v177_v36 = vsel %vm158_vm4, %v173_v22, 0.0 }
  0xcf   :  { %v114_v31 = vpop.f32.mrf.mxu0  ;;  %v155_v32 = vpop.f32.mrf.mxu1  ;;  %v161_v33 = vadd.f32 %v160_v28, %v159_v27  ;;  %v165_v40 = vsel %vm164_vm5, %v153_v24, 0.0  ;;  %v180_v41 = vsel %vm158_vm4, %v175_v30, 0.0 }
  0xd0   :  { %v178_v37 = vsel %vm158_vm4, %v174_v29, 0.0  ;;  %v182_v44 = vsel %vm164_vm5, %v176_v35, 0.0 }
  0xd1   :  { %v163_v38 = vadd.f32 %v162_v34, %v161_v33  ;;  %v179_v39 = vadd.f32 %v178_v37, %v177_v36 }
  0xd3   :  { %v166_v42 = vadd.f32 %v165_v40, %v163_v38  ;;  %v181_v43 = vadd.f32 %v180_v41, %v179_v39  ;;  %v213_v7 = vld [vmem:[%s379_s5] sm:$0x3f]  ;;  %v215_v9 = vld [vmem:[%s379_s5 + $0x10] sm:$0x3f] }
  0xd5   :  { %167 = vadd.xlane.f32.xlu0 %v166_v42  ;;  %v183_v45 = vadd.f32 %v182_v44, %v181_v43  ;;  %v214_v8 = vld [vmem:[%s379_s5 + $0x8] sm:$0x3f]  ;;  %v216_v10 = vld [vmem:[%s379_s5 + $0x18] sm:$0x3f] }
  0xd7   :  { %184 = vadd.xlane.f32.xlu1 %v183_v45 }
 0x15e   :  { %v168_v47 = vpop.xlane.xlu0 %167 }
 0x15f   :  { %v169_v49 = vadd.f32 %v168_v47, %v157_v46 }
 0x160   :  { %v185_v51 = vpop.xlane.xlu1 %184 }
 0x161   :  { %171 = vst.msk [vmem:[#allocation2] sm:$0x3f] %vm25_vm3, %v169_v49  ;;  %v186_v52 = vadd.f32 %v185_v51, %v172_v48 }
 0x163   :  { %187 = vst.msk [vmem:[#allocation3] sm:$0x3f] %vm25_vm3, %v186_v52 }
 0x168   :  { %v196_v55 = vld [vmem:[#allocation2] sm:$0x3f] }
 0x169   :  { %v198_v56 = vsub.f32 %v196_v55, %v197_v53 }
 0x16a   :  { %v199_v57 = vld [vmem:[#allocation3] sm:$0x3f] }
 0x16b   :  { %v201_v58 = vsub.f32 %v199_v57, %v200_v54  ;;  %v202_v59 = vmul.f32 0.0025510204, %v198_v56 }
 0x16d   :  { %v203_v60 = vmul.f32 0.0025510204, %v201_v58  ;;  %v204_v61 = vmul.f32 %v202_v59, %v202_v59 }
 0x16f   :  { %v205_v62 = vsub.f32 %v203_v60, %v204_v61 }
 0x171   :  { %v207_v63 = vadd.f32 1e-05, %v205_v62 }
 0x173   :  { %264 = vrsqrt.f32 %v207_v63 }
 0x180   :  { %v265_v1 = vpop.eup %264 }
 0x181   :  { %v209_v2 = vmul.f32 %v265_v1, %v206_v0 }
 0x183   :  { %219 = vperm.xlu1 %257, %v209_v2   ;;  %v211_v4 = vmul.f32 %v209_v2, %v202_v59 }
 0x185   :  { %v212_v5 = vsub.f32 %v210_v3, %v211_v4 }
 0x187   :  { %228 = vperm.xlu1 %257, %v212_v5  }
 0x1fe   :  { %v220_v6 = vpop.permute.xlu1 %219 }
 0x1ff   :  { %v222_v11 = vmul.f32 %v220_v6, %v213_v7  ;;  %v223_v12 = vmul.f32 %v220_v6, %v214_v8  ;;  %v224_v13 = vmul.f32 %v220_v6, %v215_v9  ;;  %v225_v14 = vmul.f32 %v220_v6, %v216_v10 }
 0x202   :  { %v229_v15 = vpop.permute.xlu1 %228 }
 0x203   :  { %v231_v16 = vadd.f32 %v229_v15, %v222_v11  ;;  %v232_v17 = vadd.f32 %v229_v15, %v223_v12  ;;  %v233_v18 = vadd.f32 %v229_v15, %v224_v13  ;;  %v234_v19 = vadd.f32 %v229_v15, %v225_v14 }
 0x205   :  { %v235_v20 = vmax.f32 %v231_v16, 0.0  ;;  %v236_v21 = vmax.f32 %v232_v17, 0.0  ;;  %v237_v22 = vmax.f32 %v233_v18, 0.0  ;;  %v238_v23 = vmax.f32 %v234_v19, 0.0 }
 0x207   :  { %239 = vst [vmem:[%s379_s5] sm:$0x3f] %v235_v20  ;;  %240 = vst [vmem:[%s379_s5 + $0x8] sm:$0x3f] %v236_v21 }
 0x208   :  { %241 = vst [vmem:[%s379_s5 + $0x10] sm:$0x3f] %v237_v22  ;;  %242 = vst.msk [vmem:[%s379_s5 + $0x18] sm:$0x3f] %vm164_vm5, %v238_v23 }

// kernel: net_forward.5
= control target key start
LH: loop header
LB: loop body
LE: loop exit
PB: predicated region body
PF: predicated region fallthrough
CT: control target
= control target key end

     0   :  { %v732_v27 = vmov 1983009808   ;;  %v134_v29 = vlaneseq  ;;  %s1106_s0 = inlined_call_operand.vmem [shape: f32[784,32], index: 0, kind: input, shape index: {}]   ;;  %s1107_s1 = inlined_call_operand.vmem [shape: f32[1,32], index: 1, kind: input, shape index: {}]   ;;  %s1108_s2 = inlined_call_operand.vmem [shape: f32[32,128], index: 2, kind: input, shape index: {}]   ;;  %s1109_s3 = inlined_call_operand.vmem [shape: f32[1,128], index: 3, kind: input, shape index: {}]   ;;  %s1110_s4 = inlined_call_operand.vmem [shape: f32[2,784], index: 4, kind: input, shape index: {}]   ;;  %s1111_s5 = inlined_call_operand.hbm [shape: f32[2,128], index: 5, kind: output, shape index: {}]  }
   0x1   :  { %v54_v0 = vld [vmem:[%s1106_s0 + $0xf8] sm:$0xff]  ;;  %v53_v2 = vld [vmem:[%s1106_s0 + $0xf0] sm:$0xff]  ;;  %v52_v6 = vld [vmem:[%s1106_s0 + $0xe8] sm:$0xff]  ;;  %v132_v28 = vunpack.c.l.s4 %v732_v27 }
   0x2   :  { %v38_v1 = vld [vmem:[%s1106_s0 + $0x78] sm:$0xff]  ;;  %569 = vmatprep.subr.mxu0 %v54_v0  ;;  %v37_v4 = vld [vmem:[%s1106_s0 + $0x70] sm:$0xff]  ;;  %v36_v8 = vld [vmem:[%s1106_s0 + $0x68] sm:$0xff]  ;;  %v135_v39 = vshrl.u32 %v134_v29, 7 }
   0x3   :  { %v86_v3 = vld [vmem:[%s1106_s0 + $0x1f8] sm:$0xff]  ;;  %570 = vmatpush3.msra.mxu0 %v38_v1  ;;  %v85_v7 = vld [vmem:[%s1106_s0 + $0x1f0] sm:$0xff]  ;;  %v84_v10 = vld [vmem:[%s1106_s0 + $0x1e8] sm:$0xff]  ;;  %v133_v38 = vunpack.c.0.s8 %v132_v28 }
   0x4   :  { %v70_v5 = vld [vmem:[%s1106_s0 + $0x178] sm:$0xff]  ;;  %604 = vmatprep.subr.mxu1 %v86_v3  ;;  %571 = vmatprep.subr.mxu0 %v53_v2  ;;  %v69_v9 = vld [vmem:[%s1106_s0 + $0x170] sm:$0xff]  ;;  %v51_v11 = vld [vmem:[%s1106_s0 + $0xe0] sm:$0xff] }
   0x5   :  { %605 = vmatpush3.msra.mxu1 %v70_v5  ;;  %572 = vmatpush3.msra.mxu0 %v37_v4  ;;  %v68_v12 = vld [vmem:[%s1106_s0 + $0x168] sm:$0xff]  ;;  %v35_v13 = vld [vmem:[%s1106_s0 + $0x60] sm:$0xff]  ;;  %v50_v15 = vld [vmem:[%s1106_s0 + $0xd8] sm:$0xff]  ;;  %v895_v48 = vsub.s32 %v133_v38, %v135_v39 }
   0x6   :  { %606 = vmatprep.subr.mxu1 %v85_v7  ;;  %573 = vmatprep.subr.mxu0 %v52_v6  ;;  %v83_v14 = vld [vmem:[%s1106_s0 + $0x1e0] sm:$0xff]  ;;  %v34_v17 = vld [vmem:[%s1106_s0 + $0x58] sm:$0xff]  ;;  %v49_v19 = vld [vmem:[%s1106_s0 + $0xd0] sm:$0xff] }
   0x7   :  { %607 = vmatpush3.msra.mxu1 %v69_v9  ;;  %574 = vmatpush3.msra.mxu0 %v36_v8  ;;  %v67_v16 = vld [vmem:[%s1106_s0 + $0x160] sm:$0xff]  ;;  %v82_v18 = vld [vmem:[%s1106_s0 + $0x1d8] sm:$0xff]  ;;  %v33_v21 = vld [vmem:[%s1106_s0 + $0x50] sm:$0xff] }
   0x8   :  { %608 = vmatprep.subr.mxu1 %v84_v10  ;;  %575 = vmatprep.subr.mxu0 %v51_v11  ;;  %v66_v20 = vld [vmem:[%s1106_s0 + $0x158] sm:$0xff]  ;;  %v81_v22 = vld [vmem:[%s1106_s0 + $0x1d0] sm:$0xff]  ;;  %v48_v23 = vld [vmem:[%s1106_s0 + $0xc8] sm:$0xff] }
   0x9   :  { %609 = vmatpush3.msra.mxu1 %v68_v12  ;;  %576 = vmatpush3.msra.mxu0 %v35_v13  ;;  %v65_v24 = vld [vmem:[%s1106_s0 + $0x150] sm:$0xff]  ;;  %v32_v25 = vld [vmem:[%s1106_s0 + $0x48] sm:$0xff]  ;;  %v47_v30 = vld [vmem:[%s1106_s0 + $0xc0] sm:$0xff] }
   0xa   :  { %610 = vmatprep.subr.mxu1 %v83_v14  ;;  %577 = vmatprep.subr.mxu0 %v50_v15  ;;  %v80_v26 = vld [vmem:[%s1106_s0 + $0x1c8] sm:$0xff]  ;;  %v31_v32 = vld [vmem:[%s1106_s0 + $0x40] sm:$0xff]  ;;  %v46_v34 = vld [vmem:[%s1106_s0 + $0xb8] sm:$0xff] }
   0xb   :  { %611 = vmatpush3.msra.mxu1 %v67_v16  ;;  %578 = vmatpush3.msra.mxu0 %v34_v17  ;;  %v64_v31 = vld [vmem:[%s1106_s0 + $0x148] sm:$0xff]  ;;  %v79_v33 = vld [vmem:[%s1106_s0 + $0x1c0] sm:$0xff]  ;;  %v30_v36 = vld [vmem:[%s1106_s0 + $0x38] sm:$0xff] }
   0xc   :  { %612 = vmatprep.subr.mxu1 %v82_v18  ;;  %579 = vmatprep.subr.mxu0 %v49_v19  ;;  %v63_v35 = vld [vmem:[%s1106_s0 + $0x140] sm:$0xff]  ;;  %v78_v37 = vld [vmem:[%s1106_s0 + $0x1b8] sm:$0xff]  ;;  %v45_v40 = vld [vmem:[%s1106_s0 + $0xb0] sm:$0xff] }
   0xd   :  { %613 = vmatpush3.msra.mxu1 %v66_v20  ;;  %580 = vmatpush3.msra.mxu0 %v33_v21  ;;  %v62_v41 = vld [vmem:[%s1106_s0 + $0x138] sm:$0xff]  ;;  %v29_v42 = vld [vmem:[%s1106_s0 + $0x30] sm:$0xff]  ;;  %v44_v44 = vld [vmem:[%s1106_s0 + $0xa8] sm:$0xff] }
   0xe   :  { %614 = vmatprep.subr.mxu1 %v81_v22  ;;  %581 = vmatprep.subr.mxu0 %v48_v23  ;;  %v77_v43 = vld [vmem:[%s1106_s0 + $0x1b0] sm:$0xff]  ;;  %v28_v46 = vld [vmem:[%s1106_s0 + $0x28] sm:$0xff]  ;;  %v43_v49 = vld [vmem:[%s1106_s0 + $0xa0] sm:$0xff] }
   0xf   :  { %615 = vmatpush3.msra.mxu1 %v65_v24  ;;  %582 = vmatpush3.msra.mxu0 %v32_v25  ;;  %v61_v45 = vld [vmem:[%s1106_s0 + $0x130] sm:$0xff]  ;;  %v76_v47 = vld [vmem:[%s1106_s0 + $0x1a8] sm:$0xff]  ;;  %v21_v51 = vld [vmem:[%s1110_s4] sm:$0xff] }
  0x10   :  { %616 = vmatprep.subr.mxu1 %v80_v26  ;;  %583 = vmatprep.subr.mxu0 %v47_v30  ;;  %v60_v50 = vld [vmem:[%s1106_s0 + $0x128] sm:$0xff]  ;;  %v27_v52 = vld [vmem:[%s1106_s0 + $0x20] sm:$0xff]  ;;  %v42_v54 = vld [vmem:[%s1106_s0 + $0x98] sm:$0xff]  ;;  %v137_v58 = vrot.slane %v21_v51, %v895_v48  ;;  %v130_v59 = vcombine.high %v21_v51, %v21_v51 }
  0x11   :  { %617 = vmatpush3.msra.mxu1 %v64_v31  ;;  %584 = vmatpush3.msra.mxu0 %v31_v32  ;;  %v75_v53 = vld [vmem:[%s1106_s0 + $0x1a0] sm:$0xff]  ;;  %v26_v56 = vld [vmem:[%s1106_s0 + $0x18] sm:$0xff]  ;;  %v41_v60 = vld [vmem:[%s1106_s0 + $0x90] sm:$0xff] }
  0x12   :  { %618 = vmatprep.subr.mxu1 %v79_v33  ;;  %585 = vmatprep.subr.mxu0 %v46_v34  ;;  %v59_v55 = vld [vmem:[%s1106_s0 + $0x120] sm:$0xff]  ;;  %v74_v57 = vld [vmem:[%s1106_s0 + $0x198] sm:$0xff]  ;;  %v25_v62 = vld [vmem:[%s1106_s0 + $0x10] sm:$0xff]  ;;  %v145_v4 = vcombine.high %v137_v58, %v137_v58  ;;  %v144_v5 = vrot.slane %v130_v59, %v895_v48 }
  0x13   :  { %619 = vmatpush3.msra.mxu1 %v63_v35  ;;  %586 = vmatpush3.msra.mxu0 %v30_v36  ;;  %v58_v61 = vld [vmem:[%s1106_s0 + $0x118] sm:$0xff]  ;;  %v73_v63 = vld [vmem:[%s1106_s0 + $0x190] sm:$0xff]  ;;  %v40_v0 = vld [vmem:[%s1106_s0 + $0x88] sm:$0xff] }
  0x14   :  { %620 = vmatprep.subr.mxu1 %v78_v37  ;;  %587 = vmatprep.subr.mxu0 %v45_v40  ;;  %v57_v1 = vld [vmem:[%s1106_s0 + $0x110] sm:$0xff]  ;;  %v24_v2 = vld [vmem:[%s1106_s0 + $0x8] sm:$0xff]  ;;  %v39_v6 = vld [vmem:[%s1106_s0 + $0x80] sm:$0xff]  ;;  %v146_v12 = vcombine.high %v144_v5, %v144_v5 }
  0x15   :  { %621 = vmatpush3.msra.mxu1 %v62_v41  ;;  %588 = vmatpush3.msra.mxu0 %v29_v42  ;;  %v72_v3 = vld [vmem:[%s1106_s0 + $0x188] sm:$0xff]  ;;  %v23_v7 = vld [vmem:[%s1106_s0] sm:$0xff]  ;;  %v118_v10 = vld [vmem:[%s1106_s0 + $0x2f8] sm:$0xff] }
  0x16   :  { %622 = vmatprep.subr.mxu1 %v77_v43  ;;  %589 = vmatprep.subr.mxu0 %v44_v44  ;;  %v56_v8 = vld [vmem:[%s1106_s0 + $0x108] sm:$0xff]  ;;  %v71_v9 = vld [vmem:[%s1106_s0 + $0x180] sm:$0xff]  ;;  %v102_v13 = vld [vmem:[%s1106_s0 + $0x278] sm:$0xff] }
  0x17   :  { %623 = vmatpush3.msra.mxu1 %v61_v45  ;;  %590 = vmatpush3.msra.mxu0 %v28_v46  ;;  %v55_v11 = vld [vmem:[%s1106_s0 + $0x100] sm:$0xff]  ;;  %v22_v14 = vld [vmem:[%s1110_s4 + $0x8] sm:$0x3f]  ;;  %v117_v15 = vld [vmem:[%s1106_s0 + $0x2f0] sm:$0xff] }
  0x18   :  { %624 = vmatprep.subr.mxu1 %v76_v47  ;;  %591 = vmatprep.subr.mxu0 %v43_v49  ;;  %v978_v16 = vrot.slane %v22_v14, %v895_v48 }
  0x19   :  { %625 = vmatpush3.msra.mxu1 %v60_v50  ;;  %592 = vmatpush3.msra.mxu0 %v27_v52 }
  0x1a   :  { %626 = vmatprep.subr.mxu1 %v75_v53  ;;  %593 = vmatprep.subr.mxu0 %v42_v54 }
  0x1b   :  { %627 = vmatpush3.msra.mxu1 %v59_v55  ;;  %594 = vmatpush3.msra.mxu0 %v26_v56 }
  0x1c   :  { %628 = vmatprep.subr.mxu1 %v74_v57  ;;  %595 = vmatprep.subr.mxu0 %v41_v60 }
  0x1d   :  { %629 = vmatpush3.msra.mxu1 %v58_v61  ;;  %596 = vmatpush3.msra.mxu0 %v25_v62 }
  0x1e   :  { %630 = vmatprep.subr.mxu1 %v73_v63  ;;  %597 = vmatprep.subr.mxu0 %v40_v0 }
  0x1f   :  { %631 = vmatpush3.msra.mxu1 %v57_v1  ;;  %598 = vmatpush3.msra.mxu0 %v24_v2 }
  0x20   :  { %632 = vmatprep.subr.mxu1 %v72_v3  ;;  %599 = vmatprep.subr.mxu0 %v39_v6 }
  0x21   :  { %236 = vmatprep.mubr.f32.mxu0 %v145_v4  ;;  %600 = vmatpush3.msra.mxu0 %v23_v7 }
  0x22   :  { %633 = vmatpush3.msra.mxu1 %v56_v8  ;;  %237 = vmatmul.mubr.f32.vlgmr.msra.gmra.mxu0 %v137_v58 }
  0x23   :  { %634 = vmatprep.subr.mxu1 %v71_v9 }
  0x24   :  { %10 = vsyncpa [#allocation3], 0  ;;  %639 = vmatprep.subr.mxu0 %v118_v10  ;;  %635 = vmatpush3.msra.mxu1 %v55_v11  ;;  %v101_v17 = vld [vmem:[%s1106_s0 + $0x270] sm:$0xff]  ;;  %v116_v18 = vld [vmem:[%s1106_s0 + $0x2e8] sm:$0xff]  ;;  %v147_v19 = vcombine.high %v22_v14, %v22_v14  ;;  %v162_v20 = vcombine.high %v978_v16, %v978_v16  ;;  %v733_v25 = vmov 0.0   ;;  %vm169_vm0 = vcmask 130048  }
  0x25   :  { %306 = vmatprep.mubr.f32.mxu1 %v146_v12  ;;  %640 = vmatpush3.msra.mxu0 %v102_v13  ;;  %v100_v21 = vld [vmem:[%s1106_s0 + $0x268] sm:$0xff]  ;;  %v115_v23 = vld [vmem:[%s1106_s0 + $0x2e0] sm:$0xff]  ;;  %v114_v27 = vld [vmem:[%s1106_s0 + $0x2d8] sm:$0xff]  ;;  %vm734_vm1 = vmmov 0   ;;  %vm463_vm2 = vcmask 261120   ;;  %vm537_vm3 = vcmask 1041408  }
  0x26   :  { %307 = vmatmul.mubr.f32.vlgmr.msra.gmra.mxu1 %v144_v5  ;;  %641 = vmatprep.subr.mxu0 %v117_v15  ;;  %v120_v22 = vld [vmem:[%s1106_s0 + $0x308] sm:$0xff]  ;;  %v99_v24 = vld [vmem:[%s1106_s0 + $0x260] sm:$0xff]  ;;  %v161_v28 = vrot.slane %v147_v19, %v895_v48  ;;  %v98_v29 = vld [vmem:[%s1106_s0 + $0x258] sm:$0xff] }
  0x27   :  { %642 = vmatpush3.msra.mxu0 %v101_v17  ;;  %376 = vmatprep.mubr.f32.mxu0 %v162_v20  ;;  %v119_v26 = vld [vmem:[%s1106_s0 + $0x300] sm:$0xff]  ;;  %v113_v30 = vld [vmem:[%s1106_s0 + $0x2d0] sm:$0xff]  ;;  %v112_v32 = vld [vmem:[%s1106_s0 + $0x2c8] sm:$0xff] }
  0x28   :  { %643 = vmatprep.subr.mxu0 %v116_v18  ;;  %682 = vmatprep.subr.mxu1 %v733_v25  ;;  %v97_v31 = vld [vmem:[%s1106_s0 + $0x250] sm:$0xff]  ;;  %v96_v33 = vld [vmem:[%s1106_s0 + $0x248] sm:$0xff]  ;;  %v111_v34 = vld [vmem:[%s1106_s0 + $0x2c0] sm:$0xff] }
  0x29   :  { %644 = vmatpush3.msra.mxu0 %v100_v21  ;;  %683 = vmatpush3.msra.mxu1 %v120_v22  ;;  %v95_v35 = vld [vmem:[%s1106_s0 + $0x240] sm:$0xff]  ;;  %v110_v36 = vld [vmem:[%s1106_s0 + $0x2b8] sm:$0xff]  ;;  %v109_v38 = vld [vmem:[%s1106_s0 + $0x2b0] sm:$0xff] }
  0x2a   :  { %645 = vmatprep.subr.mxu0 %v115_v23  ;;  %684 = vmatprep.subr.mxu1 %v733_v25  ;;  %v94_v37 = vld [vmem:[%s1106_s0 + $0x238] sm:$0xff]  ;;  %v93_v39 = vld [vmem:[%s1106_s0 + $0x230] sm:$0xff]  ;;  %v108_v40 = vld [vmem:[%s1106_s0 + $0x2a8] sm:$0xff] }
  0x2b   :  { %646 = vmatpush3.msra.mxu0 %v99_v24  ;;  %685 = vmatpush3.msra.mxu1 %v119_v26  ;;  %v92_v41 = vld [vmem:[%s1106_s0 + $0x228] sm:$0xff]  ;;  %v107_v42 = vld [vmem:[%s1106_s0 + $0x2a0] sm:$0xff]  ;;  %v106_v44 = vld [vmem:[%s1106_s0 + $0x298] sm:$0xff] }
  0x2c   :  { %647 = vmatprep.subr.mxu0 %v114_v27  ;;  %686 = vmatprep.mubr.msk.f32.mxu1 %vm734_vm1, %v733_v25  ;;  %v91_v43 = vld [vmem:[%s1106_s0 + $0x220] sm:$0xff]  ;;  %v90_v45 = vld [vmem:[%s1106_s0 + $0x218] sm:$0xff]  ;;  %v105_v46 = vld [vmem:[%s1106_s0 + $0x290] sm:$0xff] }
  0x2d   :  { %648 = vmatpush3.msra.mxu0 %v98_v29  ;;  %687 = vmatmul.mubr.msk.f32.vlgmr.msra.gmra.mxu1 %vm169_vm0, %v161_v28  ;;  %v89_v47 = vld [vmem:[%s1106_s0 + $0x210] sm:$0xff]  ;;  %v104_v48 = vld [vmem:[%s1106_s0 + $0x288] sm:$0xff]  ;;  %v103_v50 = vld [vmem:[%s1106_s0 + $0x280] sm:$0xff] }
  0x2e   :  { %649 = vmatprep.subr.mxu0 %v113_v30  ;;  %689 = vmatprep.subr.mxu1 %v733_v25  ;;  %v88_v49 = vld [vmem:[%s1106_s0 + $0x208] sm:$0xff]  ;;  %v87_v51 = vld [vmem:[%s1106_s0 + $0x200] sm:$0xff]  ;;  %v455_v52 = vld [vmem:[%s1108_s2 + $0x18] sm:$0xff] }
  0x2f   :  { %650 = vmatpush3.msra.mxu0 %v97_v31  ;;  %697 = vmatprep.mubr.msk.f32.mxu1 %vm734_vm1, %v733_v25  ;;  %v454_v53 = vld [vmem:[%s1108_s2 + $0x10] sm:$0xff]  ;;  %v453_v54 = vld [vmem:[%s1108_s2 + $0x8] sm:$0xff]  ;;  %v452_v55 = vld [vmem:[%s1108_s2] sm:$0xff] }
  0x30   :  { %651 = vmatprep.subr.mxu0 %v112_v32  ;;  %690 = vmatpush3.msra.mxu1 %v455_v52  ;;  %v565_v63 = vld [vmem:[%s1107_s1] ss:$0 sm:$0xff]  ;;  %s735_s1 = smov [#allocation2]  }
  0x31   :  { %652 = vmatpush3.msra.mxu0 %v96_v33  ;;  %691 = vmatprep.subr.mxu1 %v733_v25  ;;  %v567_v8 = vld [vmem:[%s1109_s3] ss:$0 sm:$0xff]  ;;  %s557_s25 = sshll.u32 %s735_s1, 4  ;;  %s558_s25 = int_to_ptr.vmem [resolvable:$true] %s557_s25 }
  0x32   :  { %653 = vmatprep.subr.mxu0 %v111_v34  ;;  %692 = vmatpush3.msra.mxu1 %v454_v53  ;;  %s710_s3 = scalar_lea.vmem %s558_s25, 32  ;;  %p715_p1 = scmp.lt.s32.totalorder %s558_s25, %s558_s25 }
  0x33   :  { %654 = vmatpush3.msra.mxu0 %v95_v35  ;;  %693 = vmatprep.subr.mxu1 %v733_v25  ;;  %p711_p0 = scmp.ne.s32.totalorder %s558_s25, %s710_s3  ;;  %p716_p2 = scmp.lt.s32.totalorder %s710_s3, %s710_s3 }
  0x34   :  { %655 = vmatprep.subr.mxu0 %v110_v36  ;;  %694 = vmatpush3.msra.mxu1 %v453_v54 }
  0x35   :  { %656 = vmatpush3.msra.mxu0 %v94_v37  ;;  %695 = vmatprep.subr.mxu1 %v733_v25  ;;  %p717_p3 = por %p716_p2, %p715_p1 }
  0x36   :  { %657 = vmatprep.subr.mxu0 %v109_v38  ;;  %696 = vmatpush3.msra.mxu1 %v452_v55 }
  0x37   :  { %658 = vmatpush3.msra.mxu0 %v93_v39  ;;  %p718_p4 = pnand %p717_p3, %p711_p0 }
  0x38   :  { %659 = vmatprep.subr.mxu0 %v108_v40 }
  0x39   :  { %660 = vmatpush3.msra.mxu0 %v92_v41 }
  0x3a   :  { %661 = vmatprep.subr.mxu0 %v107_v42 }
  0x3b   :  { %662 = vmatpush3.msra.mxu0 %v91_v43 }
  0x3c   :  { %663 = vmatprep.subr.mxu0 %v106_v44 }
  0x3d   :  { %664 = vmatpush3.msra.mxu0 %v90_v45 }
  0x3e   :  { %665 = vmatprep.subr.mxu0 %v105_v46 }
  0x3f   :  { %666 = vmatpush3.msra.mxu0 %v89_v47 }
  0x40   :  { %667 = vmatprep.subr.mxu0 %v104_v48 }
  0x41   :  { %668 = vmatpush3.msra.mxu0 %v88_v49 }
  0x42   :  { %669 = vmatprep.subr.mxu0 %v103_v50 }
  0x43   :  { %670 = vmatpush3.msra.mxu0 %v87_v51 }
  0x44   :  { %377 = vmatmul.mubr.f32.vlgmr.msra.gmra.mxu0 %v978_v16 }
  0xe2   :  { %v601_v60 = vpop.f32.mrf.mxu0 }
  0xe4   :  { %v602_v61 = vpop.f32.mrf.mxu0 }
  0xe5   :  { %v603_v62 = vadd.f32 %v602_v61, %v601_v60 }
  0xe6   :  { %v636_v56 = vpop.f32.mrf.mxu1 }
  0xe7   :  { %v239_v0 = vadd.f32 %v603_v62, %v565_v63 }
  0xe8   :  { %v637_v57 = vpop.f32.mrf.mxu1 }
  0xe9   :  { %v638_v1 = vadd.f32 %v637_v57, %v636_v56 }
  0xeb   :  { %v309_v4 = vadd.f32 %v638_v1, %v239_v0 }
  0xed   :  { %v448_v58 = vpop.f32.mrf.mxu1 }
  0xef   :  { %v688_v59 = vpop.f32.mrf.mxu1 }
 0x104   :  { %v671_v2 = vpop.f32.mrf.mxu0 }
 0x106   :  { %v672_v3 = vpop.f32.mrf.mxu0 }
 0x107   :  { %v673_v5 = vadd.f32 %v672_v3, %v671_v2 }
 0x109   :  { %v379_v6 = vadd.f32 %v673_v5, %v309_v4 }
 0x10b   :  { %v449_v7 = vadd.f32 %v448_v58, %v379_v6 }
 0x10d   :  { %698 = vmatmul.mubr.msk.f32.vlgmr.msra.gmra.mxu1 %vm463_vm2, %v449_v7 }
 0x1cd   :  { %v533_v9 = vpop.f32.mrf.mxu1 }
 0x1ce   :  { %v534_v10 = vadd.f32 %v567_v8, %v533_v9 }
 0x1cf   :  { %v699_v11 = vpop.f32.mrf.mxu1 }
 0x1d0   :  { %v538_v12 = vsel %vm537_vm3, %v534_v10, -inf }
 0x1d1   :  { %539 = vmax.xlane.f32.xlu0 %v538_v12 }
 0x25a   :  { %v540_v13 = vpop.xlane.xlu0 %539 }
 0x25b   :  { %v541_v14 = vsub.f32 %v534_v10, %v540_v13 }
 0x25d   :  { %v542_v15 = vmul.f32 1.442695, %v541_v14 }
 0x25f   :  { %706 = vpow2.f32 %v542_v15 }
 0x26c   :  { %v707_v16 = vpop.eup %706 }
 0x26d   :  { %v544_v17 = vsel %vm537_vm3, %v707_v16, 0.0 }
 0x26e   :  { %545 = vadd.xlane.f32.xlu0 %v544_v17 }
 0x2f7   :  { %v546_v18 = vpop.xlane.xlu0 %545 }
 0x2f8   :  { %708 = vlog2.f32 %v546_v18 }
 0x305   :  { %v709_v19 = vpop.eup %708 }
 0x306   :  { %v548_v20 = vmul.f32 0.6931472, %v709_v19 }
 0x308   :  { %v549_v21 = vsub.f32 %v541_v14, %v548_v20 }
 0x30a   :  { %550 = vst [vmem:[#allocation2] sm:$0x3] %v549_v21 }
 0x30b   :  { %721 = shalt.err (!%p718_p4)
}
 0x30c   :  { %560 = dma.vmem_to_hbm [thread:$0]  %s558_s25, 32, %s1111_s5, [#allocation3]  }
 0x30d   :  { %730 = dma.done.wait [#allocation3], 32  }
 0x30e   :  { %731 = vsyncadd [#allocation3], 4294967264 }
 0x30f   :  { %564 = vsyncpa [#allocation3], 1 }

</bundles_post_ra>
